<compile_context>
chip_gen: v7x
topology: tpu7x:2x2x1
jax: 0.10.0
libtpu: 0.0.40
codegen_flags: <defaults>
</compile_context>

<pallas_src>
import functools
import math

import numpy as np
import jax
import jax.numpy as jnp
from jax.experimental import pallas as pl
from jax.experimental.pallas import tpu as pltpu


# --------------------------------- kernel ------------------------------------
def _sdpa_kernel(*refs, has_mask, qkv_dim):
    """One (batch, q-tile) grid step: all heads processed in one contraction."""
    if has_mask:
        q_ref, k_ref, v_ref, m_ref, ctx_ref, att_ref = refs
    else:
        q_ref, k_ref, v_ref, ctx_ref, att_ref = refs
        m_ref = None

    # q_ref[0]: (H, bq, D)   k_ref[0] / v_ref[0]: (H, Lk, D)
    scale = 1.0 / math.sqrt(qkv_dim)
    q = q_ref[0] * scale                 # fold 1/sqrt(d) into q (small axis)
    k = k_ref[0]
    v = v_ref[0]

    # Batched over heads: a single MXU pass instead of n_heads tiny matmuls.
    scores = jnp.einsum("hqd,hkd->hqk", q, k,
                        preferred_element_type=jnp.float32)   # (H, bq, Lk) f32

    if has_mask:
        scores = jnp.where(m_ref[0] > 0.0, -1e9, scores)      # masked_fill_

    # Numerically-stable softmax, all statistics in f32.
    row_max = jnp.max(scores, axis=-1, keepdims=True)
    e = jnp.exp(scores - row_max)
    denom = jnp.sum(e, axis=-1, keepdims=True)
    att = e * pl.reciprocal(denom, approx=True)               # divide on EUP

    ctx = jnp.einsum("hqk,hkd->hqd", att.astype(v.dtype), v,
                     preferred_element_type=jnp.float32)      # (H, bq, D)

    # Two contiguous block stores (no per-head partial writes).
    ctx_ref[0] = ctx.astype(ctx_ref.dtype)
    att_ref[0] = att.astype(att_ref.dtype)


# -------------------------------- wrapper ------------------------------------
def scaled_dot_product_attention(q, k, v, att_mask=None, *, block_q=None):
    """ctx, att = SDPA(q, k, v, att_mask).  att_mask=None -> mask-free kernel."""
    B, H, Lq, D = q.shape
    _, _, Lk, _ = k.shape
    assert k.shape == (B, H, Lk, D) and v.shape == (B, H, Lk, D)

    # q-tile size: full Lq when small, otherwise 128-row tiles (gives the
    # second parallel grid axis recommended for v7x's two TensorCores).
    if block_q is None:
        block_q = 128 if (Lq > 128 and Lq % 128 == 0) else Lq
    n_q = Lq // block_q

    has_mask = att_mask is not None

    inputs = [q, k, v]
    in_specs = [
        pl.BlockSpec((1, H, block_q, D), lambda b, qi: (b, 0, qi, 0)),
        pl.BlockSpec((1, H, Lk, D), lambda b, qi: (b, 0, 0, 0)),
        pl.BlockSpec((1, H, Lk, D), lambda b, qi: (b, 0, 0, 0)),
    ]
    if has_mask:
        # bool -> f32 mask for a well-supported DMA/compare path.
        inputs.append(att_mask.astype(jnp.float32))
        in_specs.append(
            pl.BlockSpec((1, H, block_q, Lk), lambda b, qi: (b, 0, qi, 0)))

    kern = functools.partial(_sdpa_kernel, has_mask=has_mask, qkv_dim=D)

    ctx, att = pl.pallas_call(
        kern,
        grid=(B, n_q),
        in_specs=in_specs,
        out_specs=[
            pl.BlockSpec((1, H, block_q, D), lambda b, qi: (b, 0, qi, 0)),
            pl.BlockSpec((1, H, block_q, Lk), lambda b, qi: (b, 0, qi, 0)),
        ],
        out_shape=[
            jax.ShapeDtypeStruct((B, H, Lq, D), q.dtype),
            jax.ShapeDtypeStruct((B, H, Lq, Lk), jnp.float32),
        ],
        compiler_params=pltpu.CompilerParams(
            dimension_semantics=("parallel", "parallel")),
    )(*inputs)
    return ctx, att


# ---------------------------------- main --------------------------------------
if __name__ == "__main__":
    key = jax.random.PRNGKey(0)
    kq, kk, kv = jax.random.split(key, 3)

    # Small shapes consistent with the module (decoder self-attention sizes).
    B, H, Lq, Lk, D = 2, 2, 8, 8, 16
    q = jax.random.normal(kq, (B, H, Lq, D), jnp.float32)
    k = jax.random.normal(kk, (B, H, Lk, D), jnp.float32)
    v = jax.random.normal(kv, (B, H, Lk, D), jnp.float32)

    # Causal mask (True == masked), broadcast over batch and heads.
    causal = jnp.triu(jnp.ones((Lq, Lk), jnp.bool_), k=1)
    att_mask = jnp.broadcast_to(causal, (B, H, Lq, Lk))

    # --- masked (decoder-style) path ---
    ctx, att = scaled_dot_product_attention(q, k, v, att_mask)
    jax.block_until_ready((ctx, att))

    # Pure-JAX reference.
    scores = jnp.einsum("bhqd,bhkd->bhqk", q, k) / math.sqrt(D)
    scores = jnp.where(att_mask, -1e9, scores)
    att_exp = jax.nn.softmax(scores, axis=-1)
    ctx_exp = jnp.einsum("bhqk,bhkd->bhqd", att_exp, v)

    np.testing.assert_allclose(np.asarray(att), np.asarray(att_exp),
                               rtol=2e-2, atol=2e-2)
    np.testing.assert_allclose(np.asarray(ctx), np.asarray(ctx_exp),
                               rtol=2e-2, atol=2e-2)

    # --- mask-free (encoder / cross-attention with all-False mask) path ---
    ctx_nm, att_nm = scaled_dot_product_attention(q, k, v, None)
    jax.block_until_ready((ctx_nm, att_nm))
    scores_nm = jnp.einsum("bhqd,bhkd->bhqk", q, k) / math.sqrt(D)
    att_nm_exp = jax.nn.softmax(scores_nm, axis=-1)
    ctx_nm_exp = jnp.einsum("bhqk,bhkd->bhqd", att_nm_exp, v)
    np.testing.assert_allclose(np.asarray(att_nm), np.asarray(att_nm_exp),
                               rtol=2e-2, atol=2e-2)
    np.testing.assert_allclose(np.asarray(ctx_nm), np.asarray(ctx_nm_exp),
                               rtol=2e-2, atol=2e-2)

    assert ctx.shape == (B, H, Lq, D)
    assert att.shape == (B, H, Lq, Lk)
    print("KERNEL_OK")
</pallas_src>

<mosaic_0001>
module attributes {stable_mosaic.version = 11 : i64} {
  func.func @_sdpa_kernel(%arg0: i32, %arg1: i32, %arg2: memref<1x2x8x16xf32, #tpu.memory_space<vmem>>, %arg3: memref<1x2x8x16xf32, #tpu.memory_space<vmem>>, %arg4: memref<1x2x8x16xf32, #tpu.memory_space<vmem>>, %arg5: memref<1x2x8x8xf32, #tpu.memory_space<vmem>>, %arg6: memref<1x2x8x16xf32, #tpu.memory_space<vmem>>, %arg7: memref<1x2x8x8xf32, #tpu.memory_space<vmem>>) attributes {dimension_semantics = [#tpu.dimension_semantics<parallel>, #tpu.dimension_semantics<parallel>], iteration_bounds = array<i64: 2, 1>, scalar_prefetch = 0 : i64, scratch_operands = 0 : i64, tpu.core_type = #tpu.core_type<tc>, window_params = [{transform_indices = @transform_0, window_bounds = array<i64: 1, 2, 8, 16>}, {transform_indices = @transform_1, window_bounds = array<i64: 1, 2, 8, 16>}, {transform_indices = @transform_2, window_bounds = array<i64: 1, 2, 8, 16>}, {transform_indices = @transform_3, window_bounds = array<i64: 1, 2, 8, 8>}, {transform_indices = @transform_4, window_bounds = array<i64: 1, 2, 8, 16>}, {transform_indices = @transform_5, window_bounds = array<i64: 1, 2, 8, 8>}]} {
    %c0 = arith.constant 0 : index
    %c0_0 = arith.constant 0 : index
    %c0_1 = arith.constant 0 : index
    %c0_2 = arith.constant 0 : index
    %0 = vector.load %arg2[%c0, %c0_0, %c0_1, %c0_2] : memref<1x2x8x16xf32, #tpu.memory_space<vmem>>, vector<1x2x8x16xf32>
    %1 = vector.shape_cast %0 : vector<1x2x8x16xf32> to vector<2x8x16xf32>
    %cst = arith.constant 2.500000e-01 : f32
    %2 = vector.broadcast %cst : f32 to vector<2x8x16xf32>
    %3 = arith.mulf %1, %2 : vector<2x8x16xf32>
    %c0_3 = arith.constant 0 : index
    %c0_4 = arith.constant 0 : index
    %c0_5 = arith.constant 0 : index
    %c0_6 = arith.constant 0 : index
    %4 = vector.load %arg3[%c0_3, %c0_4, %c0_5, %c0_6] : memref<1x2x8x16xf32, #tpu.memory_space<vmem>>, vector<1x2x8x16xf32>
    %5 = vector.shape_cast %4 : vector<1x2x8x16xf32> to vector<2x8x16xf32>
    %c0_7 = arith.constant 0 : index
    %c0_8 = arith.constant 0 : index
    %c0_9 = arith.constant 0 : index
    %c0_10 = arith.constant 0 : index
    %6 = vector.load %arg4[%c0_7, %c0_8, %c0_9, %c0_10] : memref<1x2x8x16xf32, #tpu.memory_space<vmem>>, vector<1x2x8x16xf32>
    %7 = vector.shape_cast %6 : vector<1x2x8x16xf32> to vector<2x8x16xf32>
    "tpu.trace_start"() <{level = 10 : i32, message = "hqd,hkd->hqk"}> : () -> ()
    %cst_11 = arith.constant dense<0.000000e+00> : vector<2x8x8xf32>
    %8 = tpu.matmul %3, %5, %cst_11 {dimension_numbers = #tpu.dot_dimension_numbers<[2], [2], [1], [1], [0, 0, 0, 1, 1, 1], [0], [0]>} : vector<2x8x16xf32>, vector<2x8x16xf32>, vector<2x8x8xf32> -> vector<2x8x8xf32>
    "tpu.trace_stop"() : () -> ()
    %c0_12 = arith.constant 0 : index
    %c0_13 = arith.constant 0 : index
    %c0_14 = arith.constant 0 : index
    %c0_15 = arith.constant 0 : index
    %9 = vector.load %arg5[%c0_12, %c0_13, %c0_14, %c0_15] : memref<1x2x8x8xf32, #tpu.memory_space<vmem>>, vector<1x2x8x8xf32>
    %10 = vector.shape_cast %9 : vector<1x2x8x8xf32> to vector<2x8x8xf32>
    %cst_16 = arith.constant 0.000000e+00 : f32
    %11 = vector.broadcast %cst_16 : f32 to vector<2x8x8xf32>
    %12 = arith.cmpf ogt, %10, %11 : vector<2x8x8xf32>
    %cst_17 = arith.constant -1.000000e+09 : f32
    %13 = vector.broadcast %cst_17 : f32 to vector<2x8x8xf32>
    %14 = arith.select %12, %13, %8 : vector<2x8x8xi1>, vector<2x8x8xf32>
    %cst_18 = arith.constant dense<0xFF800000> : vector<2x8xf32>
    %15 = vector.multi_reduction <maximumf>, %14, %cst_18 [2] : vector<2x8x8xf32> to vector<2x8xf32>
    %16 = vector.shape_cast %15 : vector<2x8xf32> to vector<2x8x1xf32>
    %17 = vector.broadcast %16 : vector<2x8x1xf32> to vector<2x8x8xf32>
    %18 = arith.subf %14, %17 : vector<2x8x8xf32>
    %19 = math.exp %18 : vector<2x8x8xf32>
    %cst_19 = arith.constant dense<0.000000e+00> : vector<2x8xf32>
    %20 = vector.multi_reduction <add>, %19, %cst_19 [2] : vector<2x8x8xf32> to vector<2x8xf32>
    %21 = vector.shape_cast %20 : vector<2x8xf32> to vector<2x8x1xf32>
    %22 = tpu.reciprocal %21 {approx = true} : vector<2x8x1xf32> -> vector<2x8x1xf32>
    %23 = vector.broadcast %22 : vector<2x8x1xf32> to vector<2x8x8xf32>
    %24 = arith.mulf %19, %23 : vector<2x8x8xf32>
    "tpu.trace_start"() <{level = 10 : i32, message = "hqk,hkd->hqd"}> : () -> ()
    %cst_20 = arith.constant dense<0.000000e+00> : vector<2x8x16xf32>
    %25 = tpu.matmul %24, %7, %cst_20 {dimension_numbers = #tpu.dot_dimension_numbers<[2], [1], [1], [2], [0, 0, 0, 1, 1, 2], [0], [0]>} : vector<2x8x8xf32>, vector<2x8x16xf32>, vector<2x8x16xf32> -> vector<2x8x16xf32>
    "tpu.trace_stop"() : () -> ()
    %c0_21 = arith.constant 0 : index
    %c0_22 = arith.constant 0 : index
    %c0_23 = arith.constant 0 : index
    %c0_24 = arith.constant 0 : index
    %26 = vector.load %arg6[%c0_21, %c0_22, %c0_23, %c0_24] : memref<1x2x8x16xf32, #tpu.memory_space<vmem>>, vector<1x2x8x16xf32>
    %27 = vector.shape_cast %26 : vector<1x2x8x16xf32> to vector<2x8x16xf32>
    %28 = vector.shape_cast %25 : vector<2x8x16xf32> to vector<1x2x8x16xf32>
    tpu.vector_store %arg6[%c0_21, %c0_22, %c0_23, %c0_24], %28 {strides = array<i32>} : memref<1x2x8x16xf32, #tpu.memory_space<vmem>>, vector<1x2x8x16xf32>,
    %c0_25 = arith.constant 0 : index
    %c0_26 = arith.constant 0 : index
    %c0_27 = arith.constant 0 : index
    %c0_28 = arith.constant 0 : index
    %29 = vector.load %arg7[%c0_25, %c0_26, %c0_27, %c0_28] : memref<1x2x8x8xf32, #tpu.memory_space<vmem>>, vector<1x2x8x8xf32>
    %30 = vector.shape_cast %29 : vector<1x2x8x8xf32> to vector<2x8x8xf32>
    %31 = vector.shape_cast %24 : vector<2x8x8xf32> to vector<1x2x8x8xf32>
    tpu.vector_store %arg7[%c0_25, %c0_26, %c0_27, %c0_28], %31 {strides = array<i32>} : memref<1x2x8x8xf32, #tpu.memory_space<vmem>>, vector<1x2x8x8xf32>,
    return
  }
  func.func @transform_0(%arg0: i32, %arg1: i32) -> (i32, i32, i32, i32) {
    %c0_i32 = arith.constant 0 : i32
    %c0_i32_0 = arith.constant 0 : i32
    %c0_i32_1 = arith.constant 0 : i32
    return %arg0, %c0_i32, %arg1, %c0_i32_0 : i32, i32, i32, i32
  }
  func.func @transform_1(%arg0: i32, %arg1: i32) -> (i32, i32, i32, i32) {
    %c0_i32 = arith.constant 0 : i32
    %c0_i32_0 = arith.constant 0 : i32
    %c0_i32_1 = arith.constant 0 : i32
    %c0_i32_2 = arith.constant 0 : i32
    return %arg0, %c0_i32, %c0_i32_0, %c0_i32_1 : i32, i32, i32, i32
  }
  func.func @transform_2(%arg0: i32, %arg1: i32) -> (i32, i32, i32, i32) {
    %c0_i32 = arith.constant 0 : i32
    %c0_i32_0 = arith.constant 0 : i32
    %c0_i32_1 = arith.constant 0 : i32
    %c0_i32_2 = arith.constant 0 : i32
    return %arg0, %c0_i32, %c0_i32_0, %c0_i32_1 : i32, i32, i32, i32
  }
  func.func @transform_3(%arg0: i32, %arg1: i32) -> (i32, i32, i32, i32) {
    %c0_i32 = arith.constant 0 : i32
    %c0_i32_0 = arith.constant 0 : i32
    %c0_i32_1 = arith.constant 0 : i32
    return %arg0, %c0_i32, %arg1, %c0_i32_0 : i32, i32, i32, i32
  }
  func.func @transform_4(%arg0: i32, %arg1: i32) -> (i32, i32, i32, i32) {
    %c0_i32 = arith.constant 0 : i32
    %c0_i32_0 = arith.constant 0 : i32
    %c0_i32_1 = arith.constant 0 : i32
    return %arg0, %c0_i32, %arg1, %c0_i32_0 : i32, i32, i32, i32
  }
  func.func @transform_5(%arg0: i32, %arg1: i32) -> (i32, i32, i32, i32) {
    %c0_i32 = arith.constant 0 : i32
    %c0_i32_0 = arith.constant 0 : i32
    %c0_i32_1 = arith.constant 0 : i32
    return %arg0, %c0_i32, %arg1, %c0_i32_0 : i32, i32, i32, i32
  }
}

</mosaic_0001>

<bundles_post_ra>
// kernel: tpu_custom_call.1
= control target key start
LH: loop header
LB: loop body
LE: loop exit
PB: predicated region body
PF: predicated region fallthrough
CT: control target
= control target key end

     0   :  { %s1799_s0 = inlined_call_operand.hbm [shape: f32[2,2,8,16], index: 0, kind: input, shape index: {}]   ;;  %s1800_s1 = inlined_call_operand.hbm [shape: f32[2,2,8,16], index: 1, kind: input, shape index: {}]   ;;  %s1801_s2 = inlined_call_operand.hbm [shape: f32[2,2,8,16], index: 2, kind: input, shape index: {}]   ;;  %s1802_s3 = inlined_call_operand.hbm [shape: f32[2,2,8,8], index: 3, kind: input, shape index: {}]   ;;  %s1803_s4 = inlined_call_operand.hbm [shape: f32[2,2,8,16], index: 4, kind: output, shape index: {0}]   ;;  %s1804_s5 = inlined_call_operand.hbm [shape: f32[2,2,8,8], index: 5, kind: output, shape index: {1}]  }
   0x1   :  { %1817 = sst [smem:[#allocation24_spill]] %s1799_s0 }
   0x2   :  { %1818 = sst [smem:[#allocation25_spill]] %s1800_s1 }
   0x3   :  { %11 = vsyncpa [#allocation3], 0 }
   0x4   :  { %13 = vsyncpa [#allocation3 + $0x1], 0 }
   0x5   :  { %14 = vsyncpa [#allocation6], 0 }
   0x6   :  { %16 = vsyncpa [#allocation6 + $0x1], 0 }
   0x7   :  { %17 = vsyncpa [#allocation9], 0 }
   0x8   :  { %19 = vsyncpa [#allocation9 + $0x1], 0 }
   0x9   :  { %20 = vsyncpa [#allocation4], 0 }
   0xa   :  { %22 = vsyncpa [#allocation4 + $0x1], 0 }
   0xb   :  { %23 = vsyncpa [#allocation12], 0 }
   0xc   :  { %25 = vsyncpa [#allocation12 + $0x1], 0  ;;  %s1410_s18 = smov 0   ;;  %s1412_s19 = smov 0  }
   0xd   :  { %s1414_s20 = smov 0   ;;  %s1416_s21 = smov 0  }
   0xe   :  { %s1418_s22 = smov 0   ;;  %s1420_s23 = smov 0  }
   0xf LB: > { %1819 = sst [smem:[#allocation18_spill]] %s1354_s20  ;;  %s1441_s24 = sadd.s32 4294967295, %s1366_s23   ;;  %s1366_s23 = sphi %s1420_s23, %s31_s23   ;;  %s1362_s22 = sphi %s1418_s22, %s1848_s22   ;;  %s1358_s21 = sphi %s1416_s21, %s1847_s21   ;;  %s1354_s20 = sphi %s1414_s20, %s1846_s20   ;;  %s1350_s19 = sphi %s1412_s19, %s1850_s19   ;;  %s1346_s18 = sphi %s1410_s18, %s1849_s18  }
  0x10   : > { %1820 = sst [smem:[#allocation19_spill]] %s1362_s22  ;;  %s958_s25 = sadd.s32 4294967294, %s1366_s23  }
  0x11   : > { %1821 = sst [smem:[#allocation20_spill]] %s1366_s23  ;;  %s43_s26 = sadd.s32 1, %s1362_s22 }
  0x12   : > { %s52_s27 = sadd.s32 1, %s1354_s20  ;;  %p45_p0 = scmp.ge.s32.totalorder %s43_s26, 2 }
  0x13   : > { %p59_p1 = scmp.ne.s32.totalorder %s1354_s20, %s1350_s19  ;;  %p60_p2 = scmp.eq.s32.totalorder %s1366_s23, 0 }
  0x14   : > { %p65_p3 = scmp.ne.s32.totalorder %s1350_s19, %s1346_s18  ;;  %s1852_s26 = smov (%p45_p0, %s43_s26), 0 }
  0x15   : > { %1822 = sst [smem:[#allocation21_spill]] %s1852_s26  ;;  %p1453_p4 = por %p60_p2, %p59_p1 }
  0x16   : > { %p66_p5 = scmp.eq.s32.totalorder %s1441_s24, 0  ;;  %s47_s29 = ssub.s32 %s1362_s22, %s1852_s26 }
  0x17   : > { %p171_p6 = scmp.eq.s32.totalorder %s1441_s24, 1  ;;  %p50_p7 = scmp.eq.s32.totalorder %s47_s29, 0 }
  0x18   : > { %p1461_p8 = por %p66_p5, %p65_p3  ;;  %p177_p10 = scmp.eq.s32.totalorder %s958_s25, 1 }
  0x19   : > { %p1465_p9 = por %p171_p6, %p59_p1  ;;  %p1060_p13 = scmp.lt.s32.totalorder %s1366_s23, 2 }
  0x1a   : > { %s1824_s30 = scalar_select %p1461_p8, 1, 0 }
  0x1b   : > { %s1825_s6 = scalar_select %p1465_p9, 1, 0 }
  0x1c   : > { %s1470_s7 = scalar_select %p50_p7, %s1354_s20, %s52_s27  }
  0x1d   : > { %p1472_p11 = por %p177_p10, %p65_p3  ;;  %s1479_s9 = sand.u32 1, %s1354_s20  }
  0x1e   : > { %1826 = sst [smem:[#allocation22_spill]] %s1470_s7  ;;  %s1482_s10 = sshll.u32 %s1479_s9, 4 }
  0x1f   : > { %s1827_s8 = scalar_select %p1472_p11, 1, 0 }
  0x20   : > { %s1485_s11 = sshll.u32 %s1362_s22, 8  ;;  %p1489_p0 = pnand %p1060_p13, %p1453_p4 }
  0x21   : > { %1828 = sst [smem:[#allocation23_spill]] %s1827_s8  ;;  %s247_s13 = sand.u32 1, %s1366_s23  }
  0x22   : > { %s1830_s1 = sld [smem:[#allocation25_spill]]  ;;  %s251_s17 = scalar_lea.vmem [#allocation5], %s1482_s10 }
  0x23   : > { %s258_s25 = sshll.u32 %s251_s17, 4  ;;  %s1505_s27 = scalar_lea.sflag [#allocation6], %s247_s13  ;;  %s1502_s25 = int_to_ptr.vmem [resolvable:$true] %s258_s25 }
  0x24   : > { %p1511_p4 = pneg %p1489_p0 }
  0x28   : > { %s1498_s16 = scalar_lea.hbm %s1830_s1, %s1485_s11  ;;  %s1129_s17 = scalar_lea.hbm %s1830_s1, 512 }
  0x29   : > { %s1124_s28 = scalar_lea.hbm %s1498_s16, 256  ;;  %p1130_p7 = scmp.lt.u32.totalorder %s1498_s16, %s1830_s1 }
  0x2a   : > { %p1125_p3 = scmp.ne.s32.totalorder %s1498_s16, %s1124_s28  ;;  %p1131_p10 = scmp.lt.u32.totalorder %s1129_s17, %s1124_s28 }
  0x2b   : > { %p1133_p12 = scmp.lt.u32.totalorder %s1124_s28, %s1498_s16 }
  0x2c   : > { %p1127_p5 = pnand %p1511_p4, %p1125_p3  ;;  %p1132_p13 = por %p1131_p10, %p1130_p7 }
  0x2e   : > { %p1128_p6 = pneg %p1127_p5  ;;  %p1134_p1 = por %p1133_p12, %p1132_p13 }
  0x30   : > { %p1135_p2 = pnand %p1134_p1, %p1128_p6 }
  0x32   : > { %1138 = shalt.err (!%p1135_p2)
}
  0x33   : > { %s1139_s13 = scalar_lea.vmem %s1502_s25, 256  ;;  %s1368_s14 = smov [#allocation5]  }
  0x34   : > { %p1140_p3 = scmp.ne.s32.totalorder %s1502_s25, %s1139_s13  ;;  %s1144_s15 = sshll.u32 %s1368_s14, 4  ;;  %s1145_s15 = int_to_ptr.vmem [resolvable:$false] %s1144_s15 }
  0x35   : > { %s1146_s22 = scalar_lea.vmem %s1145_s15, 512  ;;  %p1147_p9 = scmp.lt.s32.totalorder %s1502_s25, %s1145_s15 }
  0x36   : > { %p1142_p5 = pnand %p1140_p3, %p1511_p4  ;;  %p1148_p8 = scmp.lt.s32.totalorder %s1146_s22, %s1139_s13 }
  0x38   : > { %p1143_p11 = pneg %p1142_p5  ;;  %p1149_p7 = por %p1148_p8, %p1147_p9 }
  0x3a   : > { %p1150_p10 = pnand %p1149_p7, %p1143_p11 }
  0x3c   : > { %1153 = shalt.err (!%p1150_p10)
}
  0x3d   : > { %s1809_s26 = smov 128   ;;  %s1811_s28 = smov 8  }
  0x3e   : > { %1046 = dma.hbm_to_vmem [thread:$0]  (!%p1489_p0), %s1498_s16, 256, %s1502_s25, %s1505_s27, %s1809_s26, %s1809_s26, %s1811_s28  }
  0x3f   : > { %p1832_p8 = scmp.lt.s32.totalorder %s1366_s23, 3  ;;  %p1833_p9 = scmp.ge.s32.totalorder %s1366_s23, 1 }
  0x40   : > { %s1835_s0 = sld [smem:[#allocation24_spill]]  ;;  %s229_s22 = scalar_lea.vmem [#allocation2], %s1482_s10 }
  0x41   : > { %p1542_p11 = pnand %p1833_p9, %p1832_p8  ;;  %s237_s1 = sshll.u32 %s229_s22, 4  ;;  %s1553_s1 = int_to_ptr.vmem [resolvable:$true] %s237_s1 }
  0x42   : > { %s1559_s26 = scalar_lea.hbm %s1801_s2, %s1485_s11  ;;  %s226_s28 = scalar_lea.sflag [#allocation3], %s1479_s9 }
  0x43   : > { %s1834_s17 = scalar_select %p1542_p11, 1, 0 }
  0x46   : > { %s1550_s15 = scalar_lea.hbm %s1835_s0, %s1485_s11  ;;  %s1159_s20 = scalar_lea.hbm %s1835_s0, 512 }
  0x47   : > { %s1154_s7 = scalar_lea.hbm %s1550_s15, 256  ;;  %p1160_p6 = scmp.lt.u32.totalorder %s1550_s15, %s1835_s0 }
  0x48   : > { %p1155_p12 = scmp.ne.s32.totalorder %s1550_s15, %s1154_s7  ;;  %p1161_p13 = scmp.lt.u32.totalorder %s1159_s20, %s1154_s7 }
  0x49   : > { %p1163_p5 = scmp.lt.u32.totalorder %s1154_s7, %s1550_s15 }
  0x4a   : > { %p1157_p1 = pnand %p1155_p12, %p1511_p4  ;;  %p1162_p3 = por %p1161_p13, %p1160_p6 }
  0x4c   : > { %p1158_p2 = pneg %p1157_p1  ;;  %p1164_p7 = por %p1163_p5, %p1162_p3 }
  0x4e   : > { %p1165_p10 = pnand %p1164_p7, %p1158_p2 }
  0x50   : > { %1168 = shalt.err (!%p1165_p10)
}
  0x51   : > { %s1169_s22 = scalar_lea.vmem %s1553_s1, 256  ;;  %s1371_s16 = smov [#allocation2]  }
  0x52   : > { %p1170_p8 = scmp.ne.s32.totalorder %s1553_s1, %s1169_s22  ;;  %s1174_s25 = sshll.u32 %s1371_s16, 4  ;;  %s1175_s25 = int_to_ptr.vmem [resolvable:$false] %s1174_s25 }
  0x53   : > { %s1176_s23 = scalar_lea.vmem %s1175_s25, 512  ;;  %p1177_p1 = scmp.lt.s32.totalorder %s1553_s1, %s1175_s25 }
  0x54   : > { %p1172_p9 = pnand %p1170_p8, %p1511_p4  ;;  %p1178_p11 = scmp.lt.s32.totalorder %s1176_s23, %s1169_s22 }
  0x56   : > { %p1173_p12 = pneg %p1172_p9  ;;  %p1179_p6 = por %p1178_p11, %p1177_p1 }
  0x58   : > { %p1180_p13 = pnand %p1179_p6, %p1173_p12 }
  0x5a   : > { %1183 = shalt.err (!%p1180_p13)
}
  0x5b   : > { %s1836_s20 = smov 8   ;;  %s1837_s7 = smov 128  }
  0x5c   : > { %1043 = dma.hbm_to_vmem [thread:$0]  (!%p1489_p0), %s1550_s15, 256, %s1553_s1, %s226_s28, %s1837_s7, %s1837_s7, %s1836_s20  }
  0x5d   : > { %s272_s8 = scalar_lea.vmem [#allocation7], %s1482_s10  ;;  %s1184_s14 = scalar_lea.hbm %s1559_s26, 256 }
  0x5e   : > { %s279_s13 = sshll.u32 %s272_s8, 4  ;;  %p1185_p11 = scmp.ne.s32.totalorder %s1559_s26, %s1184_s14  ;;  %s1589_s13 = int_to_ptr.vmem [resolvable:$true] %s279_s13 }
  0x5f   : > { %s1189_s25 = scalar_lea.hbm %s1801_s2, 512  ;;  %p1190_p5 = scmp.lt.u32.totalorder %s1559_s26, %s1801_s2 }
  0x60   : > { %p1187_p2 = pnand %p1185_p11, %p1511_p4  ;;  %p1191_p7 = scmp.lt.u32.totalorder %s1189_s25, %s1184_s14 }
  0x61   : > { %p1193_p8 = scmp.lt.u32.totalorder %s1184_s14, %s1559_s26 }
  0x62   : > { %p1188_p3 = pneg %p1187_p2  ;;  %p1192_p10 = por %p1191_p7, %p1190_p5 }
  0x64   : > { %p1194_p9 = por %p1193_p8, %p1192_p10 }
  0x66   : > { %p1195_p12 = pnand %p1194_p9, %p1188_p3 }
  0x68   : > { %1198 = shalt.err (!%p1195_p12)
}
  0x69   : > { %s1199_s1 = scalar_lea.vmem %s1589_s13, 256  ;;  %s1372_s28 = smov [#allocation7]  }
  0x6a   : > { %p1200_p1 = scmp.ne.s32.totalorder %s1589_s13, %s1199_s1  ;;  %s1204_s15 = sshll.u32 %s1372_s28, 4  ;;  %s1205_s15 = int_to_ptr.vmem [resolvable:$false] %s1204_s15 }
  0x6b   : > { %s1206_s0 = scalar_lea.vmem %s1205_s15, 512  ;;  %p1207_p11 = scmp.lt.s32.totalorder %s1589_s13, %s1205_s15 }
  0x6c   : > { %p1202_p6 = pnand %p1200_p1, %p1511_p4  ;;  %p1208_p2 = scmp.lt.s32.totalorder %s1206_s0, %s1199_s1 }
  0x6e   : > { %p1203_p13 = pneg %p1202_p6  ;;  %p1209_p5 = por %p1208_p2, %p1207_p11 }
  0x70   : > { %p1210_p7 = pnand %p1209_p5, %p1203_p13 }
  0x72   : > { %1213 = shalt.err (!%p1210_p7)
}
  0x73   : > { %1049 = dma.hbm_to_vmem [thread:$0]  (!%p1489_p0), %s1559_s26, 256, %s1589_s13, %s1505_s27, %s1837_s7, %s1837_s7, %s1836_s20  }
  0x74   : > { %s1620_s22 = scalar_lea.hbm %s1802_s3, %s1485_s11  ;;  %s293_s16 = scalar_lea.vmem [#allocation8], %s1482_s10 }
  0x75   : > { %s301_s25 = sshll.u32 %s293_s16, 4  ;;  %s290_s23 = scalar_lea.sflag [#allocation9], %s1479_s9  ;;  %s1623_s25 = int_to_ptr.vmem [resolvable:$true] %s301_s25 }
  0x76   : > { %s1214_s1 = scalar_lea.hbm %s1620_s22, 256  ;;  %s1219_s13 = scalar_lea.hbm %s1802_s3, 512 }
  0x77   : > { %p1215_p3 = scmp.ne.s32.totalorder %s1620_s22, %s1214_s1  ;;  %p1220_p9 = scmp.lt.u32.totalorder %s1620_s22, %s1802_s3 }
  0x78   : > { %p1221_p12 = scmp.lt.u32.totalorder %s1219_s13, %s1214_s1  ;;  %p1223_p6 = scmp.lt.u32.totalorder %s1214_s1, %s1620_s22 }
  0x79   : > { %p1217_p10 = pnand %p1215_p3, %p1511_p4 }
  0x7a   : > { %p1222_p1 = por %p1221_p12, %p1220_p9 }
  0x7b   : > { %p1218_p8 = pneg %p1217_p10 }
  0x7c   : > { %p1224_p13 = por %p1223_p6, %p1222_p1 }
  0x7e   : > { %p1225_p11 = pnand %p1224_p13, %p1218_p8 }
  0x80   : > { %1228 = shalt.err (!%p1225_p11)
}
  0x81   : > { %s1229_s10 = scalar_lea.vmem %s1623_s25, 256  ;;  %s1373_s15 = smov [#allocation8]  }
  0x82   : > { %p1230_p2 = scmp.ne.s32.totalorder %s1623_s25, %s1229_s10  ;;  %s1234_s0 = sshll.u32 %s1373_s15, 4  ;;  %s1235_s0 = int_to_ptr.vmem [resolvable:$false] %s1234_s0 }
  0x83   : > { %s1236_s8 = scalar_lea.vmem %s1235_s0, 512  ;;  %p1237_p3 = scmp.lt.s32.totalorder %s1623_s25, %s1235_s0 }
  0x84   : > { %p1232_p5 = pnand %p1230_p2, %p1511_p4  ;;  %p1238_p10 = scmp.lt.s32.totalorder %s1236_s8, %s1229_s10 }
  0x86   : > { %p1233_p7 = pneg %p1232_p5  ;;  %p1239_p9 = por %p1238_p10, %p1237_p3 }
  0x88   : > { %p1240_p12 = pnand %p1239_p9, %p1233_p7 }
  0x8a   : > { %1243 = shalt.err (!%p1240_p12)
}
  0x8b   : > { %1052 = dma.hbm_to_vmem [thread:$0]  (!%p1489_p0), %s1620_s22, 256, %s1623_s25, %s290_s23, %s1837_s7, %s1837_s7, %s1836_s20  }
  0x8c   : > { %p1838_p4 = scmp.ne.s32.totalorder %s1834_s17, 0 }
  0x8d   : > { %s1655_s29 = sand.u32 (!%p1838_p4), 1, %s1350_s19   ;;  %p1839_p8 = scmp.ne.s32.totalorder (!%p1838_p4), %s1824_s30, 0 }
  0x8e   : > { %313 = sbr.rel (%p1838_p4) target bundleno = 919 (0x397), region = 36  ;;  %s1658_s14 = sshll.u32 (!%p1838_p4), %s1655_s29, 4 }
  0x8f   : > { %s316_s12 = scalar_lea.sflag (!%p1838_p4), [#allocation3], %s1655_s29  ;;  %s319_s16 = scalar_lea.vmem (!%p1838_p4), [#allocation2], %s1658_s14 }
  0x95   : > { %1325 = dma.done.wait (%p1839_p8), %s316_s12, 256  }
  0x96   : > { %1327 = vsyncadd (%p1839_p8), %s316_s12, 4294967040  ;;  %s324_s9 = sand.u32 1, %s1441_s24   ;;  %s328_s20 = scalar_lea.vmem [#allocation5], %s1658_s14 }
  0x97   : > { %s325_s17 = scalar_lea.sflag [#allocation6], %s324_s9 }
  0x98   : > { %1329 = dma.done.wait (%p1839_p8), %s325_s17, 512  }
  0x99   : > { %1331 = vsyncadd (%p1839_p8), %s325_s17, 4294966784  ;;  %s337_s7 = scalar_lea.vmem [#allocation7], %s1658_s14  ;;  %s343_s22 = scalar_lea.sflag [#allocation9], %s1655_s29 }
  0x9a   : > { %s346_s25 = scalar_lea.vmem [#allocation8], %s1658_s14 }
  0x9b   : > { %1333 = dma.done.wait (%p1839_p8), %s343_s22, 256  }
  0x9c   : > { %1335 = vsyncadd (%p1839_p8), %s343_s22, 4294967040  ;;  %v1374_v0 = vmov 0.0   ;;  %vm1375_vm0 = vmmov 0   ;;  %vm401_vm1 = vcmask 130048   ;;  %v397_v1 = vld [vmem:[%s328_s20] sm:$0xff]  ;;  %v398_v3 = vld [vmem:[%s328_s20 + $0x8] sm:$0xff] }
  0x9d   : > { %1008 = vmatprep.subr.mxu0 %v1374_v0  ;;  %1010 = vmatprep.mubr.msk.f32.mxu0 %vm1375_vm0, %v1374_v0  ;;  %v393_v2 = vld [vmem:[%s319_s16] sm:$0xff]  ;;  %v394_v5 = vld [vmem:[%s319_s16 + $0x8] sm:$0xff]  ;;  %vm560_vm4 = vcmask 64512   ;;  %s392_s24 = scalar_lea.vmem [#allocation11], %s1658_s14  ;;  %s998_s30 = sshll.u32 %s1358_s21, 8 }
  0x9e   : > { %1013 = vmatprep.subr.mxu1 %v1374_v0  ;;  %1015 = vmatprep.mubr.msk.f32.mxu1 %vm1375_vm0, %v1374_v0  ;;  %v395_v4 = vmul.f32 0.25, %v393_v2  ;;  %v396_v6 = vmul.f32 0.25, %v394_v5  ;;  %v554_v7 = vld [vmem:[%s346_s25] sm:$0xff]  ;;  %v555_v8 = vld [vmem:[%s346_s25 + $0x8] sm:$0xff]  ;;  %s770_s23 = sshll.u32 %s392_s24, 4  ;;  %s1706_s26 = scalar_lea.hbm %s1804_s5, %s998_s30  ;;  %s1708_s23 = int_to_ptr.vmem [resolvable:$true] %s770_s23 }
  0x9f   : > { %1009 = vmatpush3.xpose.msk.msra.mxu0 %vm401_vm1, %v397_v1  ;;  %1014 = vmatpush3.xpose.msk.msra.mxu1 %vm401_vm1, %v398_v3  ;;  %vm556_vm2 = vcmp.gt.f32.partialorder %v554_v7, 0.0  ;;  %vm557_vm3 = vcmp.gt.f32.partialorder %v555_v8, 0.0  ;;  %v399_v27 = vld [vmem:[%s337_s7] sm:$0xff]  ;;  %v400_v28 = vld [vmem:[%s337_s7 + $0x8] sm:$0xff]  ;;  %s739_s13 = scalar_lea.sflag [#allocation12], %s1655_s29  ;;  %s1244_s11 = scalar_lea.vmem %s1708_s23, 256 }
  0xa0   : > { %1018 = vmatprep.subr.mxu0 %v1374_v0  ;;  %1023 = vmatprep.subr.mxu1 %v1374_v0  ;;  %p1245_p0 = scmp.ne.s32.totalorder %s1708_s23, %s1244_s11  ;;  %p1840_p1 = scmp.ne.s32.totalorder %s1825_s6, 0 }
  0xa1   : > { %s1376_s28 = smov [#allocation11]  }
  0xa2   : > { %1011 = vmatmul.mubr.msk.f32.vlgmr.msra.gmra.mrb[0].mxu0 %vm401_vm1, %v395_v4  ;;  %1016 = vmatmul.mubr.msk.f32.vlgmr.msra.gmra.mrb[0].mxu1 %vm401_vm1, %v396_v6  ;;  %p1246_p6 = pnand %p1245_p0, %p1840_p1  ;;  %s1248_s10 = sshll.u32 %s1376_s28, 4  ;;  %s1249_s10 = int_to_ptr.vmem [resolvable:$false] %s1248_s10 }
  0xa3   : > { %1020 = vmatprep.mubr.msk.f32.mxu0 %vm1375_vm0, %v1374_v0  ;;  %1025 = vmatprep.mubr.msk.f32.mxu1 %vm1375_vm0, %v1374_v0  ;;  %s1250_s15 = scalar_lea.vmem %s1249_s10, 512  ;;  %p1251_p11 = scmp.lt.s32.totalorder %s1708_s23, %s1249_s10 }
  0xa4   : > { %1019 = vmatpush3.msra.mxu0 %v399_v27  ;;  %1024 = vmatpush3.msra.mxu1 %v400_v28  ;;  %p1247_p13 = pneg %p1246_p6  ;;  %p1252_p2 = scmp.lt.s32.totalorder %s1250_s15, %s1244_s11 }
  0xa6   : > { %p1253_p5 = por %p1252_p2, %p1251_p11 }
  0xa8   : > { %p1254_p7 = pnand %p1253_p5, %p1247_p13 }
 0x175   : > { %v474_v9 = vpop.f32.mrb[0].mxu0  ;;  %v550_v10 = vpop.f32.mrb[0].mxu1 }
 0x176   : > { %v558_v11 = vsel %vm556_vm2, -1e+09, %v474_v9  ;;  %v1012_v12 = vpop.f32.mrb[1].mxu0  ;;  %v559_v13 = vsel %vm557_vm3, -1e+09, %v550_v10  ;;  %v1017_v14 = vpop.f32.mrb[1].mxu1 }
 0x177   : > { %v561_v15 = vsel %vm560_vm4, %v558_v11, -inf  ;;  %v564_v16 = vsel %vm560_vm4, %v559_v13, -inf }
 0x178   : > { %562 = vmax.xlane.f32.xlu0 %v561_v15 }
 0x17c   : > { %565 = vmax.xlane.f32.xlu0 %v564_v16 }
 0x205   : > { %v563_v17 = vpop.xlane.xlu0 %562 }
 0x206   : > { %v567_v18 = vsub.f32 %v558_v11, %v563_v17 }
 0x208   : > { %v569_v19 = vmul.f32 1.442695, %v567_v18 }
 0x209   : > { %v566_v20 = vpop.xlane.xlu0 %565 }
 0x20a   : > { %1116 = vpow2.f32 %v569_v19  ;;  %v568_v21 = vsub.f32 %v559_v13, %v566_v20 }
 0x20c   : > { %v571_v22 = vmul.f32 1.442695, %v568_v21 }
 0x20e   : > { %1118 = vpow2.f32 %v571_v22 }
 0x214   : > { %v1117_v23 = vpop.eup %1116 }
 0x215   : > { %v573_v24 = vsel %vm560_vm4, %v1117_v23, 0.0 }
 0x216   : > { %574 = vadd.xlane.f32.xlu1 %v573_v24 }
 0x218   : > { %v1119_v25 = vpop.eup %1118 }
 0x219   : > { %v576_v26 = vsel %vm560_vm4, %v1119_v25, 0.0 }
 0x21a   : > { %577 = vadd.xlane.f32.xlu1 %v576_v26 }
 0x2a3   : > { %v575_v29 = vpop.xlane.xlu1 %574 }
 0x2a4   : > { %1120 = vrcp.f32 %v575_v29 }
 0x2a7   : > { %v578_v30 = vpop.xlane.xlu1 %577 }
 0x2a8   : > { %1122 = vrcp.f32 %v578_v30 }
 0x2ae   : > { %v1121_v31 = vpop.eup %1120 }
 0x2af   : > { %v581_v32 = vmul.f32 %v1121_v31, %v1117_v23 }
 0x2b1   : > { %1021 = vmatmul.mubr.msk.f32.vlgmr.msra.gmra.mrb[2].mxu0 %vm560_vm4, %v581_v32  ;;  %731 = vst.msk [vmem:[%s392_s24] sm:$0xff] %vm560_vm4, %v581_v32 }
 0x2b2   : > { %v1123_v33 = vpop.eup %1122 }
 0x2b3   : > { %v582_v34 = vmul.f32 %v1123_v33, %v1119_v25 }
 0x2b5   : > { %1026 = vmatmul.mubr.msk.f32.vlgmr.msra.gmra.mrb[2].mxu1 %vm560_vm4, %v582_v34  ;;  %732 = vst.msk [vmem:[%s392_s24 + $0x8] sm:$0xff] %vm560_vm4, %v582_v34 }
 0x2b6   : > { %1257 = shalt.err (!%p1254_p7)
}
 0x2b7   : > { %s1258_s0 = scalar_lea.hbm %s1706_s26, 256  ;;  %s1262_s16 = scalar_lea.hbm %s1804_s5, 512 }
 0x2b8   : > { %p1259_p3 = scmp.ne.s32.totalorder %s1706_s26, %s1258_s0  ;;  %p1263_p12 = scmp.lt.u32.totalorder %s1706_s26, %s1804_s5 }
 0x2b9   : > { %p1264_p4 = scmp.lt.u32.totalorder %s1262_s16, %s1258_s0  ;;  %p1266_p0 = scmp.lt.u32.totalorder %s1258_s0, %s1706_s26 }
 0x2ba   : > { %p1260_p10 = pnand %p1259_p3, %p1840_p1 }
 0x2bb   : > { %p1265_p8 = por %p1264_p4, %p1263_p12 }
 0x2bc   : > { %p1261_p9 = pneg %p1260_p10 }
 0x2bd   : > { %p1267_p6 = por %p1266_p0, %p1265_p8 }
 0x2bf   : > { %p1268_p13 = pnand %p1267_p6, %p1261_p9 }
 0x2c1   : > { %1271 = shalt.err (!%p1268_p13)
}
 0x2c2   : > { %s1377_s20 = smov 128   ;;  %s1378_s7 = smov 8  }
 0x2c3   : > { %1037 = dma.vmem_to_hbm [thread:$0]  (%p1840_p1), %s1708_s23, 256, %s1706_s26, %s739_s13, %s1377_s20, %s1377_s20, %s1378_s7  }
 0x2c4   : > { %s385_s22 = scalar_lea.vmem [#allocation10], %s1658_s14  ;;  %s1746_s27 = scalar_lea.hbm %s1803_s4, %s998_s30 }
 0x2c5   : > { %s753_s25 = sshll.u32 %s385_s22, 4  ;;  %s734_s14 = scalar_lea.sflag [#allocation4], %s1655_s29  ;;  %s1739_s25 = int_to_ptr.vmem [resolvable:$true] %s753_s25 }
 0x2c6   : > { %s1272_s23 = scalar_lea.vmem %s1739_s25, 256  ;;  %s1379_s26 = smov [#allocation10]  }
 0x2c7   : > { %p1273_p11 = scmp.ne.s32.totalorder %s1739_s25, %s1272_s23  ;;  %s1276_s21 = sshll.u32 %s1379_s26, 4  ;;  %s1277_s21 = int_to_ptr.vmem [resolvable:$false] %s1276_s21 }
 0x2c8   : > { %s1278_s13 = scalar_lea.vmem %s1277_s21, 512  ;;  %p1279_p7 = scmp.lt.s32.totalorder %s1739_s25, %s1277_s21 }
 0x2c9   : > { %p1274_p2 = pnand %p1273_p11, %p1840_p1  ;;  %p1280_p3 = scmp.lt.s32.totalorder %s1278_s13, %s1272_s23 }
 0x2cb   : > { %p1275_p5 = pneg %p1274_p2  ;;  %p1281_p10 = por %p1280_p3, %p1279_p7 }
 0x2cd   : > { %p1282_p9 = pnand %p1281_p10, %p1275_p5 }
 0x384   : > { %v652_v35 = vpop.f32.mrb[2].mxu0 }
 0x385   : > { %729 = vst.msk [vmem:[%s385_s22] sm:$0xff] %vm401_vm1, %v652_v35  ;;  %v1022_v36 = vpop.f32.mrb[3].mxu0 }
 0x388   : > { %v725_v37 = vpop.f32.mrb[2].mxu1 }
 0x389   : > { %730 = vst.msk [vmem:[%s385_s22 + $0x8] sm:$0xff] %vm401_vm1, %v725_v37  ;;  %v1027_v38 = vpop.f32.mrb[3].mxu1 }
 0x38a   : > { %1285 = shalt.err (!%p1282_p9)
}
 0x38b   : > { %s1286_s30 = scalar_lea.hbm %s1746_s27, 256  ;;  %s1290_s10 = scalar_lea.hbm %s1803_s4, 512 }
 0x38c   : > { %p1287_p12 = scmp.ne.s32.totalorder %s1746_s27, %s1286_s30  ;;  %p1291_p0 = scmp.lt.u32.totalorder %s1746_s27, %s1803_s4 }
 0x38d   : > { %p1292_p6 = scmp.lt.u32.totalorder %s1290_s10, %s1286_s30  ;;  %p1294_p11 = scmp.lt.u32.totalorder %s1286_s30, %s1746_s27 }
 0x38e   : > { %p1288_p4 = pnand %p1287_p12, %p1840_p1 }
 0x38f   : > { %p1293_p13 = por %p1292_p6, %p1291_p0 }
 0x390   : > { %p1289_p8 = pneg %p1288_p4 }
 0x391   : > { %p1295_p2 = por %p1294_p11, %p1293_p13 }
 0x393   : > { %p1296_p5 = pnand %p1295_p2, %p1289_p8 }
 0x395   : > { %1299 = shalt.err (!%p1296_p5)
}
 0x396   : > { %1036 = dma.vmem_to_hbm [thread:$0]  (%p1840_p1), %s1739_s25, 256, %s1746_s27, %s734_s14, %s1377_s20, %s1377_s20, %s1378_s7  }
 0x397 PF: > { %s1841_s8 = sld [smem:[#allocation23_spill]]  ;;  %s1842_s12 = sld [smem:[#allocation20_spill]] }
 0x398   : > { %s785_s16 = sand.u32 1, %s1346_s18  }
 0x399   : > { %s786_s9 = scalar_lea.sflag [#allocation4], %s785_s16 }
 0x39d   : > { %p1843_p7 = scmp.ne.s32.totalorder %s1841_s8, 0  ;;  %p1844_p3 = scmp.ge.s32.totalorder %s1842_s12, 2 }
 0x39f   : > { %p1054_p10 = pnand %p1844_p3, %p1843_p7 }
 0x3a1   : > { %1337 = dma.done.wait (!%p1054_p10), %s786_s9, 256  }
 0x3a2   : > { %1339 = vsyncadd (!%p1054_p10), %s786_s9, 4294967040  ;;  %s795_s6 = scalar_lea.sflag [#allocation12], %s785_s16 }
 0x3a3   : > { %1341 = dma.done.wait (!%p1054_p10), %s795_s6, 256  }
 0x3a4   : > { %1343 = vsyncadd (!%p1054_p10), %s795_s6, 4294967040  ;;  %s31_s23 = sadd.s32 1, %s1842_s12   ;;  %s1845_s29 = sld [smem:[#allocation18_spill]] }
 0x3a5   : > { %p28_p9 = scmp.ge.s32.totalorder %s31_s23, 4   ;;  %s1846_s20 = sld [smem:[#allocation22_spill]] }
 0x3a6   : > { %s1847_s21 = sld [smem:[#allocation19_spill]]  ;;  %s1848_s22 = sld [smem:[#allocation21_spill]] }
 0x3a7   : > { %s1849_s18 = smov %s1350_s19  ;;  %30 = sbr.rel (!%p28_p9) target bundleno = 15 (0xf), region = 135 }
 0x3aa   : > { %s1850_s19 = smov %s1845_s29 }
 0x3ae   :  { %800 = vsyncpa [#allocation3], 1 }
 0x3af   :  { %802 = vsyncpa [#allocation3 + $0x1], 1 }
 0x3b0   :  { %803 = vsyncpa [#allocation6], 1 }
 0x3b1   :  { %805 = vsyncpa [#allocation6 + $0x1], 1 }
 0x3b2   :  { %806 = vsyncpa [#allocation9], 1 }
 0x3b3   :  { %808 = vsyncpa [#allocation9 + $0x1], 1 }
 0x3b4   :  { %809 = vsyncpa [#allocation4], 1 }
 0x3b5   :  { %811 = vsyncpa [#allocation4 + $0x1], 1 }
 0x3b6   :  { %812 = vsyncpa [#allocation12], 1 }
 0x3b7   :  { %814 = vsyncpa [#allocation12 + $0x1], 1 }

</bundles_post_ra>
